<compile_context>
chip_gen: v5e
topology: v5e:2x2
jax: 0.10.0
libtpu: 0.0.40
codegen_flags: <defaults>
</compile_context>

<pallas_src>
import math

import numpy as np
import jax
import jax.numpy as jnp
from jax import lax
from jax.experimental import pallas as pl
from jax.experimental.pallas import tpu as pltpu


def _round_up(x, m):
    return (x + m - 1) // m * m


# ------------------------------------------------------------------ projections

def qkv_proj_kernel(hgeo_ref, hpos_ref, wqk_ref, wv_ref, qk_ref, v_ref):
    # One row tile of all B*N points; weights shared across the whole batch.
    qk_ref[...] = jnp.dot(hgeo_ref[...], wqk_ref[...],
                          preferred_element_type=jnp.float32).astype(qk_ref.dtype)
    v_ref[...] = jnp.dot(hpos_ref[...], wv_ref[...],
                         preferred_element_type=jnp.float32).astype(v_ref.dtype)


def out_proj_kernel(x_ref, w_ref, b_ref, o_ref):
    o_ref[...] = (jnp.dot(x_ref[...], w_ref[...],
                          preferred_element_type=jnp.float32)
                  + b_ref[...]).astype(o_ref.dtype)


def _row_tiling(rows, max_tile=512):
    tile = min(max_tile, _round_up(rows, 8))
    padded = _round_up(rows, tile)
    return tile, padded


def qkv_projection(h_geo2d, h_pos2d, wqk_t, wv_t):
    R, D = h_geo2d.shape
    TR, Rp = _row_tiling(R)
    if Rp != R:
        pad = ((0, Rp - R), (0, 0))
        h_geo2d = jnp.pad(h_geo2d, pad)
        h_pos2d = jnp.pad(h_pos2d, pad)
    Dqk = wqk_t.shape[1]
    Dv = wv_t.shape[1]
    qk, v = pl.pallas_call(
        qkv_proj_kernel,
        out_shape=(jax.ShapeDtypeStruct((Rp, Dqk), h_geo2d.dtype),
                   jax.ShapeDtypeStruct((Rp, Dv), h_pos2d.dtype)),
        grid_spec=pl.GridSpec(
            grid=(Rp // TR,),
            in_specs=[pl.BlockSpec((TR, D), lambda i: (i, 0)),
                      pl.BlockSpec((TR, D), lambda i: (i, 0)),
                      pl.BlockSpec((D, Dqk), lambda i: (0, 0)),
                      pl.BlockSpec((D, Dv), lambda i: (0, 0))],
            out_specs=[pl.BlockSpec((TR, Dqk), lambda i: (i, 0)),
                       pl.BlockSpec((TR, Dv), lambda i: (i, 0))]),
        compiler_params=pltpu.CompilerParams(dimension_semantics=("parallel",)),
    )(h_geo2d, h_pos2d, wqk_t, wv_t)
    return qk[:R], v[:R]


def out_projection(x2d, wo_t, bo):
    R, D = x2d.shape
    TR, Rp = _row_tiling(R)
    if Rp != R:
        x2d = jnp.pad(x2d, ((0, Rp - R), (0, 0)))
    Do = wo_t.shape[1]
    out = pl.pallas_call(
        out_proj_kernel,
        out_shape=jax.ShapeDtypeStruct((Rp, Do), x2d.dtype),
        grid_spec=pl.GridSpec(
            grid=(Rp // TR,),
            in_specs=[pl.BlockSpec((TR, D), lambda i: (i, 0)),
                      pl.BlockSpec((D, Do), lambda i: (0, 0)),
                      pl.BlockSpec((1, Do), lambda i: (0, 0))],
            out_specs=pl.BlockSpec((TR, Do), lambda i: (i, 0))),
        compiler_params=pltpu.CompilerParams(dimension_semantics=("parallel",)),
    )(x2d, wo_t, bo.reshape(1, Do))
    return out[:R]


# -------------------------------------------------------- block-diagonal attention

def cluster_attn_kernel(sizes_ref, qk_ref, v_ref, out_ref):
    # One grid step == one (batch, cluster) tile of block-diagonal attention.
    b = pl.program_id(0)
    c = pl.program_id(1)
    size = sizes_ref[b, c]          # actual #points in this cluster (SMEM scalar)
    mc = qk_ref.shape[2]            # padded cluster capacity
    d = v_ref.shape[3]              # d_embed

    @pl.when(size > 0)
    def _():
        qk = qk_ref[0, 0]                                        # (MC, 2D) f32
        q = qk[:, :d] * (1.0 / math.sqrt(d))                     # scale in f32
        k = qk[:, d:]
        v = v_ref[0, 0]                                          # (MC, D)

        # Scores on the MXU: bf16 operands, f32 accumulation.
        s = lax.dot_general(q.astype(jnp.bfloat16), k.astype(jnp.bfloat16),
                            (((1,), (1,)), ((), ())),
                            preferred_element_type=jnp.float32)  # (MC, MC)

        # Mask only padded key slots (col >= size); real members never masked,
        # so every valid row keeps a finite max (its own diagonal).
        col = lax.broadcasted_iota(jnp.int32, (mc, mc), 1)
        s = jnp.where(col < size, s, -jnp.inf)

        # Row softmax in f32; divide goes to the EUP via approx reciprocal.
        m = jnp.max(s, axis=-1, keepdims=True)
        p = jnp.exp(s - m)
        attn = p * pl.reciprocal(jnp.sum(p, axis=-1, keepdims=True), approx=True)

        o = jnp.dot(attn.astype(jnp.bfloat16), v.astype(jnp.bfloat16),
                    preferred_element_type=jnp.float32)          # (MC, D)
        out_ref[0, 0] = o.astype(out_ref.dtype)

    @pl.when(size == 0)
    def _():
        # Empty cluster slot: skip all compute; zero the tile so the output is
        # never returned uninitialized (these rows are discarded anyway).
        out_ref[...] = jnp.zeros_like(out_ref)


def cluster_attention(qk_pad, v_pad, sizes):
    B, C, MC, Dqk = qk_pad.shape
    D = v_pad.shape[3]
    return pl.pallas_call(
        cluster_attn_kernel,
        out_shape=jax.ShapeDtypeStruct((B, C, MC, D), v_pad.dtype),
        grid_spec=pltpu.PrefetchScalarGridSpec(
            num_scalar_prefetch=1,               # per-(batch, cluster) sizes -> SMEM
            grid=(B, C),
            in_specs=[pl.BlockSpec((1, 1, MC, Dqk), lambda b, c, sz: (b, c, 0, 0)),
                      pl.BlockSpec((1, 1, MC, D), lambda b, c, sz: (b, c, 0, 0))],
            out_specs=pl.BlockSpec((1, 1, MC, D), lambda b, c, sz: (b, c, 0, 0))),
        compiler_params=pltpu.CompilerParams(
            dimension_semantics=("parallel", "parallel")),
    )(sizes, qk_pad, v_pad)


# --------------------------------------------------------------------- wrapper

def build_cluster_tables(kmeans_idx_dict_batchlist, num_points):
    """Encode the per-batch {cluster: point indices} dicts as dense padded tables.

    Each cluster occupies a fixed-capacity slot of MC rows (max cluster size
    rounded up to a sublane multiple of 8).  Host-side preprocessing (the kmeans
    dicts are a host data structure in the original module).
    """
    B = len(kmeans_idx_dict_batchlist)
    C = max(len(d) for d in kmeans_idx_dict_batchlist)
    max_sz = max(len(np.asarray(ix).reshape(-1))
                 for d in kmeans_idx_dict_batchlist for ix in d.values())
    MC = _round_up(max(max_sz, 1), 8)

    gather_idx = np.zeros((B, C, MC), np.int32)
    sizes = np.zeros((B, C), np.int32)
    slot_of = np.zeros((B, num_points), np.int32)
    for b, d in enumerate(kmeans_idx_dict_batchlist):
        for c, (_, idx) in enumerate(d.items()):
            idx = np.asarray(idx).reshape(-1).astype(np.int64)
            n = idx.shape[0]
            sizes[b, c] = n
            gather_idx[b, c, :n] = idx
            slot_of[b, idx] = c * MC + np.arange(n)
    return (jnp.asarray(gather_idx), jnp.asarray(sizes),
            jnp.asarray(slot_of), MC)


def dlsa_block(h_pos, h_geo, kmeans_idx_dict_batchlist, params):
    """Pallas implementation of DLSABlock.forward.

    h_pos, h_geo : (B, N, D) float32
    kmeans_idx_dict_batchlist : per-batch dict {cluster: array of point indices}
    """
    B, N, D = h_pos.shape
    wq, wk, wv, wo, bo = (params["wq"], params["wk"], params["wv"],
                          params["wo"], params["bo"])

    gather_idx, sizes, slot_of, MC = build_cluster_tables(
        kmeans_idx_dict_batchlist, N)
    C = sizes.shape[1]

    # 1) Batch-fused projections over all B*N rows; Wq/Wk fused into one operand.
    wqk_t = jnp.concatenate([wq.T, wk.T], axis=1)                # (D, 2D)
    qk, v = qkv_projection(h_geo.reshape(B * N, D), h_pos.reshape(B * N, D),
                           wqk_t, wv.T)
    qk = qk.reshape(B, N, 2 * D)
    v = v.reshape(B, N, D)

    # 2) Gather rows into fixed-capacity per-cluster slots (block-diagonal layout).
    # TODO(synk): this gather (and the inverse below) stays in XLA; it could be
    # folded into the attention kernel with pl.Element-gather index_maps.
    flat_idx = gather_idx.reshape(B, C * MC)[..., None]
    qk_pad = jnp.take_along_axis(qk, flat_idx, axis=1).reshape(B, C, MC, 2 * D)
    v_pad = jnp.take_along_axis(v, flat_idx, axis=1).reshape(B, C, MC, D)

    # 3) Per-cluster attention (only padding is masked, empty tiles skipped).
    attn_pad = cluster_attention(qk_pad, v_pad, sizes)           # (B, C, MC, D)

    # 4) Back to the original point order.
    attn = jnp.take_along_axis(attn_pad.reshape(B, C * MC, D),
                               slot_of[..., None], axis=1)       # (B, N, D)

    # 5) Batch-fused output projection (with bias).
    out = out_projection(attn.reshape(B * N, D), wo.T, bo)
    return out.reshape(B, N, D)


# ------------------------------------------------------------------- reference

def reference_np(h_pos, h_geo, kmeans_idx_dict_batchlist, params):
    """Pure numpy re-implementation of the torch per-cluster loops."""
    h_pos = np.asarray(h_pos, np.float32)
    h_geo = np.asarray(h_geo, np.float32)
    wq = np.asarray(params["wq"]); wk = np.asarray(params["wk"])
    wv = np.asarray(params["wv"]); wo = np.asarray(params["wo"])
    bo = np.asarray(params["bo"])
    B, N, D = h_pos.shape
    Q = h_geo @ wq.T
    K = h_geo @ wk.T
    V = h_pos @ wv.T
    attn = np.zeros_like(V)
    for b, d in enumerate(kmeans_idx_dict_batchlist):
        for _, idx in d.items():
            idx = np.asarray(idx).reshape(-1)
            Qc = Q[b][idx] / math.sqrt(D)
            Kc = K[b][idx]
            Vc = V[b][idx]
            s = Qc @ Kc.T
            s = s - s.max(axis=1, keepdims=True)
            p = np.exp(s)
            p = p / p.sum(axis=1, keepdims=True)
            attn[b][idx] = p @ Vc
    return attn @ wo.T + bo


if __name__ == "__main__":
    B, N, D = 2, 16, 32   # batch, points, d_embed

    key = jax.random.PRNGKey(0)
    (k_pos, k_geo, k_wq, k_wk, k_wv, k_wo, k_bo,
     k_p0, k_p1) = jax.random.split(key, 9)

    h_pos = jax.random.normal(k_pos, (B, N, D), jnp.float32)
    h_geo = jax.random.normal(k_geo, (B, N, D), jnp.float32)

    # PyTorch-style uniform(-1/sqrt(D), 1/sqrt(D)) parameters.
    bound = 1.0 / math.sqrt(D)
    params = {
        "wq": jax.random.uniform(k_wq, (D, D), jnp.float32, -bound, bound),
        "wk": jax.random.uniform(k_wk, (D, D), jnp.float32, -bound, bound),
        "wv": jax.random.uniform(k_wv, (D, D), jnp.float32, -bound, bound),
        "wo": jax.random.uniform(k_wo, (D, D), jnp.float32, -bound, bound),
        "bo": jax.random.uniform(k_bo, (D,), jnp.float32, -bound, bound),
    }

    # kmeans_idx_dict_batchlist: unequal cluster sizes and a different number of
    # clusters per batch element (exercises padding masks and empty-tile skip).
    cluster_sizes = [[5, 3, 6, 2], [7, 4, 5]]
    perms = [np.asarray(jax.random.permutation(k_p0, N)),
             np.asarray(jax.random.permutation(k_p1, N))]
    kmeans_idx_dict_batchlist = []
    for b in range(B):
        d, off = {}, 0
        for c, sz in enumerate(cluster_sizes[b]):
            d[c] = perms[b][off:off + sz].astype(np.int64)
            off += sz
        kmeans_idx_dict_batchlist.append(d)

    out = dlsa_block(h_pos, h_geo, kmeans_idx_dict_batchlist, params)
    out = jax.block_until_ready(out)

    ref = reference_np(h_pos, h_geo, kmeans_idx_dict_batchlist, params)
    # bf16 MXU operands (f32 accumulation) on the two attention matmuls give
    # ~1e-3-level deviations vs the pure-f32 reference; 1e-2 still catches any
    # structural/masking/permutation bug (those are O(0.1+)).
    assert np.allclose(np.asarray(out), ref, atol=1e-2, rtol=1e-2), \
        "Pallas kernel mismatch vs per-cluster reference"

    print("KERNEL_OK")
</pallas_src>

<mosaic_0001>
module attributes {stable_mosaic.version = 11 : i64} {
  func.func @qkv_proj_kernel(%arg0: i32, %arg1: memref<32x32xf32, #tpu.memory_space<vmem>>, %arg2: memref<32x32xf32, #tpu.memory_space<vmem>>, %arg3: memref<32x64xf32, #tpu.memory_space<vmem>>, %arg4: memref<32x32xf32, #tpu.memory_space<vmem>>, %arg5: memref<32x64xf32, #tpu.memory_space<vmem>>, %arg6: memref<32x32xf32, #tpu.memory_space<vmem>>) attributes {dimension_semantics = [#tpu.dimension_semantics<parallel>], iteration_bounds = array<i64: 1>, scalar_prefetch = 0 : i64, scratch_operands = 0 : i64, tpu.core_type = #tpu.core_type<tc>, window_params = [{transform_indices = @transform_0, window_bounds = array<i64: 32, 32>}, {transform_indices = @transform_1, window_bounds = array<i64: 32, 32>}, {pipeline_mode = #tpu.pipeline_mode<synchronous>, transform_indices = @transform_2, window_bounds = array<i64: 32, 64>}, {pipeline_mode = #tpu.pipeline_mode<synchronous>, transform_indices = @transform_3, window_bounds = array<i64: 32, 32>}, {transform_indices = @transform_4, window_bounds = array<i64: 32, 64>}, {transform_indices = @transform_5, window_bounds = array<i64: 32, 32>}]} {
    %c0 = arith.constant 0 : index
    %c0_0 = arith.constant 0 : index
    %0 = vector.load %arg1[%c0, %c0_0] : memref<32x32xf32, #tpu.memory_space<vmem>>, vector<32x32xf32>
    %c0_1 = arith.constant 0 : index
    %c0_2 = arith.constant 0 : index
    %1 = vector.load %arg3[%c0_1, %c0_2] : memref<32x64xf32, #tpu.memory_space<vmem>>, vector<32x64xf32>
    %cst = arith.constant dense<0.000000e+00> : vector<32x64xf32>
    %2 = tpu.matmul %0, %1, %cst {dimension_numbers = #tpu.dot_dimension_numbers<[1], [0], [0], [1], [0, 0, 1, 1], [], []>} : vector<32x32xf32>, vector<32x64xf32>, vector<32x64xf32> -> vector<32x64xf32>
    %c0_3 = arith.constant 0 : index
    %c0_4 = arith.constant 0 : index
    %3 = vector.load %arg5[%c0_3, %c0_4] : memref<32x64xf32, #tpu.memory_space<vmem>>, vector<32x64xf32>
    tpu.vector_store %arg5[%c0_3, %c0_4], %2 {strides = array<i32>} : memref<32x64xf32, #tpu.memory_space<vmem>>, vector<32x64xf32>,
    %c0_5 = arith.constant 0 : index
    %c0_6 = arith.constant 0 : index
    %4 = vector.load %arg2[%c0_5, %c0_6] : memref<32x32xf32, #tpu.memory_space<vmem>>, vector<32x32xf32>
    %c0_7 = arith.constant 0 : index
    %c0_8 = arith.constant 0 : index
    %5 = vector.load %arg4[%c0_7, %c0_8] : memref<32x32xf32, #tpu.memory_space<vmem>>, vector<32x32xf32>
    %cst_9 = arith.constant dense<0.000000e+00> : vector<32x32xf32>
    %6 = tpu.matmul %4, %5, %cst_9 {dimension_numbers = #tpu.dot_dimension_numbers<[1], [0], [0], [1], [0, 0, 1, 1], [], []>} : vector<32x32xf32>, vector<32x32xf32>, vector<32x32xf32> -> vector<32x32xf32>
    %c0_10 = arith.constant 0 : index
    %c0_11 = arith.constant 0 : index
    %7 = vector.load %arg6[%c0_10, %c0_11] : memref<32x32xf32, #tpu.memory_space<vmem>>, vector<32x32xf32>
    tpu.vector_store %arg6[%c0_10, %c0_11], %6 {strides = array<i32>} : memref<32x32xf32, #tpu.memory_space<vmem>>, vector<32x32xf32>,
    return
  }
  func.func @transform_0(%arg0: i32) -> (i32, i32) {
    %c0_i32 = arith.constant 0 : i32
    %c0_i32_0 = arith.constant 0 : i32
    return %arg0, %c0_i32 : i32, i32
  }
  func.func @transform_1(%arg0: i32) -> (i32, i32) {
    %c0_i32 = arith.constant 0 : i32
    %c0_i32_0 = arith.constant 0 : i32
    return %arg0, %c0_i32 : i32, i32
  }
  func.func @transform_2(%arg0: i32) -> (i32, i32) {
    %c0_i32 = arith.constant 0 : i32
    %c0_i32_0 = arith.constant 0 : i32
    %c0_i32_1 = arith.constant 0 : i32
    return %c0_i32, %c0_i32_0 : i32, i32
  }
  func.func @transform_3(%arg0: i32) -> (i32, i32) {
    %c0_i32 = arith.constant 0 : i32
    %c0_i32_0 = arith.constant 0 : i32
    %c0_i32_1 = arith.constant 0 : i32
    return %c0_i32, %c0_i32_0 : i32, i32
  }
  func.func @transform_4(%arg0: i32) -> (i32, i32) {
    %c0_i32 = arith.constant 0 : i32
    %c0_i32_0 = arith.constant 0 : i32
    return %arg0, %c0_i32 : i32, i32
  }
  func.func @transform_5(%arg0: i32) -> (i32, i32) {
    %c0_i32 = arith.constant 0 : i32
    %c0_i32_0 = arith.constant 0 : i32
    return %arg0, %c0_i32 : i32, i32
  }
}

</mosaic_0001>

<bundles_post_ra>
// kernel: tpu_custom_call.1
= control target key start
LH: loop header
LB: loop body
LE: loop exit
PB: predicated region body
PF: predicated region fallthrough
CT: control target
= control target key end

     0   :  { %11 = vsyncpa [#allocation3], 0  ;;  %s499_s0 = inlined_call_operand.hbm [shape: f32[32,32], index: 0, kind: input, shape index: {}]   ;;  %s500_s1 = inlined_call_operand.hbm [shape: f32[32,32], index: 1, kind: input, shape index: {}]   ;;  %s501_s2 = inlined_call_operand.hbm [shape: f32[32,64], index: 2, kind: input, shape index: {}]   ;;  %s502_s3 = inlined_call_operand.hbm [shape: f32[32,32], index: 3, kind: input, shape index: {}]   ;;  %s503_s4 = inlined_call_operand.hbm [shape: f32[32,64], index: 4, kind: output, shape index: {0}]   ;;  %s504_s5 = inlined_call_operand.hbm [shape: f32[32,32], index: 5, kind: output, shape index: {1}]  }
   0x1   :  { %12 = vsyncpa [#allocation6], 0 }
   0x2   :  { %13 = vsyncpa [#allocation9], 0 }
   0x3   :  { %14 = vsyncpa [#allocation4], 0 }
   0x4   :  { %15 = vsyncpa [#allocation12], 0  ;;  %s33_s20 = sshll.u32 %s500_s1, 4  ;;  %s409_s21 = smov [#allocation5]   ;;  %s34_s20 = int_to_ptr.hbm [resolvable:$true] %s33_s20 }
   0x5   :  { %s35_s22 = sshll.u32 %s409_s21, 4  ;;  %s20_s25 = sshll.u32 %s499_s0, 4  ;;  %s36_s22 = int_to_ptr.vmem [resolvable:$true] %s35_s22  ;;  %s21_s25 = int_to_ptr.hbm [resolvable:$true] %s20_s25 }
   0x6   :  { %s410_s26 = smov 128   ;;  %s411_s27 = smov 8  }
   0x7   :  { %41 = dma.hbm_to_vmem [thread:$0]  %s34_s20, 512, %s36_s22, [#allocation6], %s410_s26, %s410_s26, %s411_s27  }
   0x8   :  { %s412_s28 = smov [#allocation2]   ;;  %s46_s1 = sshll.u32 %s501_s2, 4  ;;  %s47_s1 = int_to_ptr.hbm [resolvable:$true] %s46_s1 }
   0x9   :  { %s22_s29 = sshll.u32 %s412_s28, 4  ;;  %s59_s8 = sshll.u32 %s502_s3, 4  ;;  %s23_s29 = int_to_ptr.vmem [resolvable:$true] %s22_s29  ;;  %s60_s8 = int_to_ptr.hbm [resolvable:$true] %s59_s8 }
   0xa   :  { %28 = dma.hbm_to_vmem [thread:$0]  %s21_s25, 512, %s23_s29, [#allocation3], %s410_s26, %s410_s26, %s411_s27  }
   0xb   :  { %s413_s9 = smov [#allocation7]   ;;  %s414_s11 = smov [#allocation8]  }
   0xc   :  { %s48_s10 = sshll.u32 %s413_s9, 4  ;;  %s61_s2 = sshll.u32 %s414_s11, 4  ;;  %s49_s10 = int_to_ptr.vmem [resolvable:$true] %s48_s10  ;;  %s62_s2 = int_to_ptr.vmem [resolvable:$true] %s61_s2 }
   0xd   :  { %54 = dma.hbm_to_vmem [thread:$0]  %s47_s1, 512, %s49_s10, [#allocation6], %s410_s26, %s410_s26, %s411_s27  }
   0xe   :  { %67 = dma.hbm_to_vmem [thread:$0]  %s60_s8, 512, %s62_s2, [#allocation9], %s410_s26, %s410_s26, %s411_s27  }
   0xf   :  { %399 = dma.done.wait [#allocation3], 512  }
  0x10   :  { %400 = vsyncadd [#allocation3], 4294966784 }
  0x11   :  { %401 = dma.done.wait [#allocation6], 1024  }
  0x12   :  { %402 = vsyncadd [#allocation6], 4294966272 }
  0x13   :  { %403 = dma.done.wait [#allocation9], 512  }
  0x14   :  { %404 = vsyncadd [#allocation9], 4294966784  ;;  %v91_v0 = vld [vmem:[#allocation7 + $0x18] sm:$0xff]  ;;  %v90_v2 = vld [vmem:[#allocation7 + $0x10] sm:$0xff]  ;;  %vm92_vm0 = vcmask 261120   ;;  %vm134_vm1 = vcmask 523264  }
  0x15   :  { %v146_v1 = vld [vmem:[#allocation8 + $0x18] sm:$0xff]  ;;  %239 = vmatpush.msra.mxu2 %v91_v0  ;;  %v145_v3 = vld [vmem:[#allocation8 + $0x10] sm:$0xff]  ;;  %v89_v4 = vld [vmem:[#allocation7 + $0x8] sm:$0xff]  ;;  %117 = vmatpush.msra.mxu0 %v91_v0  ;;  %s415_s3 = smov [#allocation10]   ;;  %s198_s15 = sshll.u32 %s503_s4, 4  ;;  %s199_s15 = int_to_ptr.hbm [resolvable:$true] %s198_s15 }
  0x16   :  { %243 = vmatpush.msra.mxu3 %v146_v1  ;;  %v144_v5 = vld [vmem:[#allocation8 + $0x8] sm:$0xff]  ;;  %171 = vmatpush.msra.mxu1 %v146_v1  ;;  %v88_v6 = vld [vmem:[#allocation7] sm:$0xff]  ;;  %v86_v8 = vld [vmem:[#allocation2 + $0x10] sm:$0xff]  ;;  %s196_s12 = sshll.u32 %s415_s3, 4  ;;  %s416_s16 = smov [#allocation11]   ;;  %s197_s12 = int_to_ptr.vmem [resolvable:$true] %s196_s12 }
  0x17   :  { %240 = vmatpush.msra.mxu2 %v90_v2  ;;  %v143_v7 = vld [vmem:[#allocation8] sm:$0xff]  ;;  %118 = vmatpush.msra.mxu0 %v90_v2  ;;  %v141_v9 = vld [vmem:[#allocation5 + $0x10] sm:$0xff]  ;;  %v87_v12 = vld [vmem:[#allocation2 + $0x18] sm:$0xff]  ;;  %s209_s17 = sshll.u32 %s416_s16, 4  ;;  %s211_s20 = sshll.u32 %s504_s5, 4  ;;  %s210_s17 = int_to_ptr.vmem [resolvable:$true] %s209_s17  ;;  %s212_s20 = int_to_ptr.hbm [resolvable:$true] %s211_s20 }
  0x18   :  { %244 = vmatpush.msra.mxu3 %v145_v3  ;;  %172 = vmatpush.msra.mxu1 %v145_v3  ;;  %v84_v10 = vld [vmem:[#allocation2] sm:$0xff]  ;;  %v142_v13 = vld [vmem:[#allocation5 + $0x18] sm:$0xff]  ;;  %v85_v14 = vld [vmem:[#allocation2 + $0x8] sm:$0xff] }
  0x19   :  { %241 = vmatpush.msra.mxu2 %v89_v4  ;;  %119 = vmatpush.msra.mxu0 %v89_v4  ;;  %v139_v11 = vld [vmem:[#allocation5] sm:$0xff]  ;;  %v140_v15 = vld [vmem:[#allocation5 + $0x8] sm:$0xff] }
  0x1a   :  { %245 = vmatpush.msra.mxu3 %v144_v5  ;;  %173 = vmatpush.msra.mxu1 %v144_v5 }
  0x1b   :  { %242 = vmatpush.msra.mxu2 %v88_v6  ;;  %120 = vmatpush.msra.mxu0 %v88_v6 }
  0x1c   :  { %246 = vmatpush.msra.mxu3 %v143_v7  ;;  %233 = vmatmul.msk.f32.vlgmr.msra.gmra.mxu2 %vm92_vm0, %v86_v8 }
  0x1d   :  { %237 = vmatmul.msk.f32.vlgmr.msra.gmra.mxu3 %vm92_vm0, %v141_v9  ;;  %174 = vmatpush.msra.mxu1 %v143_v7 }
  0x1e   :  { %231 = vmatmul.msk.f32.vlgmr.msra.gmra.mxu0 %vm92_vm0, %v84_v10  ;;  %235 = vmatmul.msk.f32.vlgmr.msra.gmra.mxu1 %vm92_vm0, %v139_v11 }
  0x24   :  { %234 = vmatmul.msk.f32.gmra.mxu2 %vm92_vm0, %v87_v12 }
  0x25   :  { %238 = vmatmul.msk.f32.gmra.mxu3 %vm92_vm0, %v142_v13 }
  0x26   :  { %232 = vmatmul.msk.f32.gmra.mxu0 %vm92_vm0, %v85_v14  ;;  %236 = vmatmul.msk.f32.gmra.mxu1 %vm92_vm0, %v140_v15 }
  0x9b   :  { %v122_v16 = vpop.f32.mrf.mxu0  ;;  %v176_v17 = vpop.f32.mrf.mxu1 }
  0x9c   :  { %135 = vst.msk [vmem:[#allocation10] sm:$0xff] %vm134_vm1, %v122_v16 }
  0x9d   :  { %188 = vst.msk [vmem:[#allocation11] sm:$0xff] %vm92_vm0, %v176_v17 }
  0x9f   :  { %v128_v18 = vpop.f32.mrf.mxu2 }
  0xa0   :  { %v182_v19 = vpop.f32.mrf.mxu3  ;;  %137 = vst.msk [vmem:[#allocation10 + $0x10] sm:$0xff] %vm134_vm1, %v128_v18 }
  0xa1   :  { %190 = vst.msk [vmem:[#allocation11 + $0x10] sm:$0xff] %vm92_vm0, %v182_v19 }
  0xa3   :  { %v125_v20 = vpop.f32.mrf.mxu0  ;;  %v179_v21 = vpop.f32.mrf.mxu1 }
  0xa4   :  { %136 = vst.msk [vmem:[#allocation10 + $0x8] sm:$0xff] %vm134_vm1, %v125_v20 }
  0xa5   :  { %189 = vst.msk [vmem:[#allocation11 + $0x8] sm:$0xff] %vm92_vm0, %v179_v21 }
  0xa7   :  { %v131_v22 = vpop.f32.mrf.mxu2 }
  0xa8   :  { %v185_v23 = vpop.f32.mrf.mxu3  ;;  %138 = vst.msk [vmem:[#allocation10 + $0x18] sm:$0xff] %vm134_vm1, %v131_v22 }
  0xa9   :  { %191 = vst.msk [vmem:[#allocation11 + $0x18] sm:$0xff] %vm92_vm0, %v185_v23  ;;  %204 = dma.vmem_to_hbm [thread:$0]  %s197_s12, 512, %s199_s15, [#allocation4], %s410_s26, %s410_s26, %s411_s27  }
  0xaa   :  { %217 = dma.vmem_to_hbm [thread:$0]  %s210_s17, 512, %s212_s20, [#allocation12], %s410_s26, %s410_s26, %s411_s27  }
  0xab   :  { %405 = dma.done.wait [#allocation4], 512  }
  0xac   :  { %406 = vsyncadd [#allocation4], 4294966784 }
  0xad   :  { %407 = dma.done.wait [#allocation12], 512  }
  0xae   :  { %408 = vsyncadd [#allocation12], 4294966784 }
  0xaf   :  { %226 = vsyncpa [#allocation3], 1 }
  0xb0   :  { %227 = vsyncpa [#allocation6], 1 }
  0xb1   :  { %228 = vsyncpa [#allocation9], 1 }
  0xb2   :  { %229 = vsyncpa [#allocation4], 1 }
  0xb3   :  { %230 = vsyncpa [#allocation12], 1 }

</bundles_post_ra>
